<compile_context>
chip_gen: v5e
topology: v5e:2x2
jax: 0.10.0
libtpu: 0.0.40
codegen_flags: <defaults>
</compile_context>

<pallas_src>
import jax
import jax.numpy as jnp
from jax.experimental import pallas as pl
from jax.experimental.pallas import tpu as pltpu


def _make_kernel(eps: float):
    def kernel(x_ref, t_ref, dice_ref, ce_ref,
               inter_acc, ssum_acc, tsum_acc, ce_acc):
        s = pl.program_id(1)

        @pl.when(s == 0)
        def _init():
            inter_acc[...] = jnp.zeros_like(inter_acc)
            ssum_acc[...] = jnp.zeros_like(ssum_acc)
            tsum_acc[...] = jnp.zeros_like(tsum_acc)
            ce_acc[...] = jnp.zeros_like(ce_acc)

        x = x_ref[0].astype(jnp.float32)  # (C, TS)
        t = t_ref[0].astype(jnp.float32)  # (C, TS)

        # One exp over the (C, TS) tile, shared between log-softmax and sigmoid.
        m = jnp.max(x, axis=0, keepdims=True)                    # (1, TS)
        e = jnp.exp(x - m)                                       # (C, TS)
        lse = jnp.log(jnp.sum(e, axis=0, keepdims=True)) + m     # (1, TS)

        # Soft-target CE: accumulate per position (lane-dense); lane reduce deferred.
        ce_acc[...] += jnp.sum(t * (lse - x), axis=0, keepdims=True)   # (1, TS)

        # sigmoid(x) = exp(x - m) / (exp(x - m) + exp(-m))  -- reuses e.
        sig = e / (e + jnp.exp(-m))                              # (C, TS)

        # Dice partials: per-channel spatial sums accumulated across S tiles.
        inter_acc[...] += jnp.sum(sig * t, axis=1, keepdims=True)      # (C, 1)
        ssum_acc[...] += jnp.sum(sig, axis=1, keepdims=True)           # (C, 1)
        tsum_acc[...] += jnp.sum(t, axis=1, keepdims=True)             # (C, 1)

        @pl.when(s == pl.num_programs(1) - 1)
        def _finalize():
            dice = 1.0 - (2.0 * inter_acc[...] + eps) / (
                ssum_acc[...] + tsum_acc[...] + eps)                   # (C, 1)
            dice_ref[0] = dice
            ce_ref[0] = jnp.sum(ce_acc[...], axis=1, keepdims=True)    # (1, 1)

    return kernel


def _choose_tile_s(S: int, C: int, budget_bytes: int = 20 * 1024 * 1024) -> int:
    """Pick a spatial tile (multiple of 128 dividing S, or full S) that keeps the
    double-buffered input blocks plus the CE scratch under `budget_bytes` of VMEM."""
    c_pad = ((C + 7) // 8) * 8
    # 2 inputs x 2 pipeline buffers x (c_pad x TS x 4B)  +  (8 x TS x 4B) CE scratch
    bytes_per_lane = 4 * c_pad * 4 + 8 * 4
    max_ts = max(128, budget_bytes // bytes_per_lane)
    if S <= max_ts:
        return S
    ts = (max_ts // 128) * 128
    while ts >= 128:
        if S % ts == 0:
            return ts
        ts -= 128
    # TODO(synk): pad + mask the spatial axis when S has no 128-multiple divisor.
    return S


def dice_cross_entropy_loss(inputs_nchw, targets_nchw, eps: float = 1e-6, tile_s=None):
    """inputs/targets: (B, C, H, W) logits / soft-label probabilities."""
    B, C, H, W = inputs_nchw.shape
    S = H * W
    x = inputs_nchw.reshape(B, C, S)
    t = targets_nchw.reshape(B, C, S)

    if tile_s is None:
        tile_s = _choose_tile_s(S, C)
    assert S % tile_s == 0, "tile_s must divide H*W"
    num_s = S // tile_s

    c_pad = ((C + 7) // 8) * 8
    est_vmem = 4 * c_pad * tile_s * 4 + 8 * tile_s * 4 + (2 << 20)
    vmem_limit = int(min(max(32 << 20, est_vmem), 120 << 20))

    dice_bc, ce_b = pl.pallas_call(
        _make_kernel(eps),
        out_shape=(
            jax.ShapeDtypeStruct((B, C, 1), jnp.float32),   # per-(b, c) dice term
            jax.ShapeDtypeStruct((B, 1, 1), jnp.float32),   # per-b summed CE
        ),
        grid_spec=pltpu.PrefetchScalarGridSpec(
            num_scalar_prefetch=0,
            grid=(B, num_s),
            in_specs=[
                pl.BlockSpec((1, C, tile_s), lambda b, s: (b, 0, s)),
                pl.BlockSpec((1, C, tile_s), lambda b, s: (b, 0, s)),
            ],
            out_specs=(
                pl.BlockSpec((1, C, 1), lambda b, s: (b, 0, 0)),
                pl.BlockSpec((1, 1, 1), lambda b, s: (b, 0, 0)),
            ),
            scratch_shapes=[
                pltpu.VMEM((C, 1), jnp.float32),       # intersection accumulator
                pltpu.VMEM((C, 1), jnp.float32),       # sigmoid-sum accumulator
                pltpu.VMEM((C, 1), jnp.float32),       # target-sum accumulator
                pltpu.VMEM((1, tile_s), jnp.float32),  # per-position CE accumulator
            ],
        ),
        compiler_params=pltpu.CompilerParams(
            dimension_semantics=("parallel", "arbitrary"),
            vmem_limit_bytes=vmem_limit,
        ),
    )(x, t)

    dice = jnp.mean(dice_bc)                       # mean over (b, c)
    ce = jnp.sum(ce_b) / jnp.float32(B * S)        # mean over (b, h, w)
    return dice + ce


def _reference(inputs, targets, eps=1e-6):
    # Pure-JAX reference matching the PyTorch module defaults.
    sig = jax.nn.sigmoid(inputs)
    inter = jnp.einsum("bcwh,bcwh->bc", sig, targets)
    sums = jnp.einsum("bcwh->bc", sig) + jnp.einsum("bcwh->bc", targets)
    dice = jnp.mean(1.0 - (2.0 * inter + eps) / (sums + eps))
    logp = jax.nn.log_softmax(inputs, axis=1)
    ce = jnp.mean(jnp.sum(-targets * logp, axis=1))
    return dice + ce


if __name__ == "__main__":
    key = jax.random.PRNGKey(0)
    k1, k2 = jax.random.split(key)
    B, C, H, W = 2, 4, 16, 16
    x = jax.random.normal(k1, (B, C, H, W), dtype=jnp.float32)
    # soft-label targets (probabilities over channel dim), as accepted by
    # nn.CrossEntropyLoss with class-probability targets.
    t = jax.nn.softmax(jax.random.normal(k2, (B, C, H, W), dtype=jnp.float32), axis=1)

    ref = _reference(x, t)

    # Default path (single spatial tile at this small size).
    loss = dice_cross_entropy_loss(x, t)
    jax.block_until_ready(loss)
    assert jnp.allclose(loss, ref, rtol=1e-5, atol=1e-5), (loss, ref)

    # Forced multi-tile path to exercise the cross-tile accumulators (S=256, TS=128).
    loss_tiled = dice_cross_entropy_loss(x, t, tile_s=128)
    jax.block_until_ready(loss_tiled)
    assert jnp.allclose(loss_tiled, ref, rtol=1e-5, atol=1e-5), (loss_tiled, ref)

    print("KERNEL_OK")
</pallas_src>

<mosaic_0001>
module attributes {stable_mosaic.version = 11 : i64} {
  func.func @kernel(%arg0: i32, %arg1: i32, %arg2: memref<1x4x256xf32, #tpu.memory_space<vmem>>, %arg3: memref<1x4x256xf32, #tpu.memory_space<vmem>>, %arg4: memref<1x4x1xf32, #tpu.memory_space<vmem>>, %arg5: memref<1x1x1xf32, #tpu.memory_space<vmem>>, %arg6: memref<4x1xf32, #tpu.memory_space<vmem>>, %arg7: memref<4x1xf32, #tpu.memory_space<vmem>>, %arg8: memref<4x1xf32, #tpu.memory_space<vmem>>, %arg9: memref<1x256xf32, #tpu.memory_space<vmem>>) attributes {dimension_semantics = [#tpu.dimension_semantics<parallel>, #tpu.dimension_semantics<arbitrary>], iteration_bounds = array<i64: 2, 1>, scalar_prefetch = 0 : i64, scratch_operands = 4 : i64, tpu.core_type = #tpu.core_type<tc>, window_params = [{transform_indices = @transform_0, window_bounds = array<i64: 1, 4, 256>}, {transform_indices = @transform_1, window_bounds = array<i64: 1, 4, 256>}, {transform_indices = @transform_2, window_bounds = array<i64: 1, 4, 1>}, {transform_indices = @transform_3, window_bounds = array<i64: 1, 1, 1>}]} {
    %c0_i32 = arith.constant 0 : i32
    %0 = arith.cmpi eq, %arg1, %c0_i32 : i32
    %1 = arith.extui %0 : i1 to i32
    %c0_i32_0 = arith.constant 0 : i32
    %2 = arith.cmpi ne, %1, %c0_i32_0 : i32
    scf.if %2 {
      %cst_30 = arith.constant 0.000000e+00 : f32
      %49 = vector.broadcast %cst_30 : f32 to vector<4x1xf32>
      %c0_31 = arith.constant 0 : index
      %c0_32 = arith.constant 0 : index
      %50 = vector.load %arg6[%c0_31, %c0_32] : memref<4x1xf32, #tpu.memory_space<vmem>>, vector<4x1xf32>
      tpu.vector_store %arg6[%c0_31, %c0_32], %49 {strides = array<i32>} : memref<4x1xf32, #tpu.memory_space<vmem>>, vector<4x1xf32>,
      %cst_33 = arith.constant 0.000000e+00 : f32
      %51 = vector.broadcast %cst_33 : f32 to vector<4x1xf32>
      %c0_34 = arith.constant 0 : index
      %c0_35 = arith.constant 0 : index
      %52 = vector.load %arg7[%c0_34, %c0_35] : memref<4x1xf32, #tpu.memory_space<vmem>>, vector<4x1xf32>
      tpu.vector_store %arg7[%c0_34, %c0_35], %51 {strides = array<i32>} : memref<4x1xf32, #tpu.memory_space<vmem>>, vector<4x1xf32>,
      %cst_36 = arith.constant 0.000000e+00 : f32
      %53 = vector.broadcast %cst_36 : f32 to vector<4x1xf32>
      %c0_37 = arith.constant 0 : index
      %c0_38 = arith.constant 0 : index
      %54 = vector.load %arg8[%c0_37, %c0_38] : memref<4x1xf32, #tpu.memory_space<vmem>>, vector<4x1xf32>
      tpu.vector_store %arg8[%c0_37, %c0_38], %53 {strides = array<i32>} : memref<4x1xf32, #tpu.memory_space<vmem>>, vector<4x1xf32>,
      %cst_39 = arith.constant 0.000000e+00 : f32
      %55 = vector.broadcast %cst_39 : f32 to vector<1x256xf32>
      %c0_40 = arith.constant 0 : index
      %c0_41 = arith.constant 0 : index
      %56 = vector.load %arg9[%c0_40, %c0_41] : memref<1x256xf32, #tpu.memory_space<vmem>>, vector<1x256xf32>
      tpu.vector_store %arg9[%c0_40, %c0_41], %55 {strides = array<i32>} : memref<1x256xf32, #tpu.memory_space<vmem>>, vector<1x256xf32>,
    } else {
    }
    %c0 = arith.constant 0 : index
    %c0_1 = arith.constant 0 : index
    %c0_2 = arith.constant 0 : index
    %3 = vector.load %arg2[%c0, %c0_1, %c0_2] : memref<1x4x256xf32, #tpu.memory_space<vmem>>, vector<1x4x256xf32>
    %4 = vector.shape_cast %3 : vector<1x4x256xf32> to vector<4x256xf32>
    %c0_3 = arith.constant 0 : index
    %c0_4 = arith.constant 0 : index
    %c0_5 = arith.constant 0 : index
    %5 = vector.load %arg3[%c0_3, %c0_4, %c0_5] : memref<1x4x256xf32, #tpu.memory_space<vmem>>, vector<1x4x256xf32>
    %6 = vector.shape_cast %5 : vector<1x4x256xf32> to vector<4x256xf32>
    %cst = arith.constant dense<0xFF800000> : vector<256xf32>
    %7 = vector.multi_reduction <maximumf>, %4, %cst [0] : vector<4x256xf32> to vector<256xf32>
    %8 = vector.shape_cast %7 : vector<256xf32> to vector<1x256xf32>
    %9 = vector.broadcast %8 : vector<1x256xf32> to vector<4x256xf32>
    %10 = arith.subf %4, %9 : vector<4x256xf32>
    %11 = math.exp %10 : vector<4x256xf32>
    %cst_6 = arith.constant dense<0.000000e+00> : vector<256xf32>
    %12 = vector.multi_reduction <add>, %11, %cst_6 [0] : vector<4x256xf32> to vector<256xf32>
    %13 = vector.shape_cast %12 : vector<256xf32> to vector<1x256xf32>
    %14 = math.log %13 : vector<1x256xf32>
    %15 = arith.addf %14, %8 : vector<1x256xf32>
    %c0_7 = arith.constant 0 : index
    %c0_8 = arith.constant 0 : index
    %16 = vector.load %arg9[%c0_7, %c0_8] : memref<1x256xf32, #tpu.memory_space<vmem>>, vector<1x256xf32>
    %17 = vector.broadcast %15 : vector<1x256xf32> to vector<4x256xf32>
    %18 = arith.subf %17, %4 : vector<4x256xf32>
    %19 = arith.mulf %6, %18 : vector<4x256xf32>
    %cst_9 = arith.constant dense<0.000000e+00> : vector<256xf32>
    %20 = vector.multi_reduction <add>, %19, %cst_9 [0] : vector<4x256xf32> to vector<256xf32>
    %21 = vector.shape_cast %20 : vector<256xf32> to vector<1x256xf32>
    %22 = arith.addf %16, %21 : vector<1x256xf32>
    %c0_10 = arith.constant 0 : index
    %c0_11 = arith.constant 0 : index
    %23 = vector.load %arg9[%c0_10, %c0_11] : memref<1x256xf32, #tpu.memory_space<vmem>>, vector<1x256xf32>
    tpu.vector_store %arg9[%c0_10, %c0_11], %22 {strides = array<i32>} : memref<1x256xf32, #tpu.memory_space<vmem>>, vector<1x256xf32>,
    %cst_12 = arith.constant 0.000000e+00 : f32
    %24 = vector.broadcast %cst_12 : f32 to vector<1x256xf32>
    %25 = arith.subf %24, %8 : vector<1x256xf32>
    %26 = math.exp %25 : vector<1x256xf32>
    %27 = vector.broadcast %26 : vector<1x256xf32> to vector<4x256xf32>
    %28 = arith.addf %11, %27 : vector<4x256xf32>
    %29 = arith.divf %11, %28 : vector<4x256xf32>
    %c0_13 = arith.constant 0 : index
    %c0_14 = arith.constant 0 : index
    %30 = vector.load %arg6[%c0_13, %c0_14] : memref<4x1xf32, #tpu.memory_space<vmem>>, vector<4x1xf32>
    %31 = arith.mulf %29, %6 : vector<4x256xf32>
    %cst_15 = arith.constant dense<0.000000e+00> : vector<4xf32>
    %32 = vector.multi_reduction <add>, %31, %cst_15 [1] : vector<4x256xf32> to vector<4xf32>
    %33 = vector.shape_cast %32 : vector<4xf32> to vector<4x1xf32>
    %34 = arith.addf %30, %33 : vector<4x1xf32>
    %c0_16 = arith.constant 0 : index
    %c0_17 = arith.constant 0 : index
    %35 = vector.load %arg6[%c0_16, %c0_17] : memref<4x1xf32, #tpu.memory_space<vmem>>, vector<4x1xf32>
    tpu.vector_store %arg6[%c0_16, %c0_17], %34 {strides = array<i32>} : memref<4x1xf32, #tpu.memory_space<vmem>>, vector<4x1xf32>,
    %c0_18 = arith.constant 0 : index
    %c0_19 = arith.constant 0 : index
    %36 = vector.load %arg7[%c0_18, %c0_19] : memref<4x1xf32, #tpu.memory_space<vmem>>, vector<4x1xf32>
    %cst_20 = arith.constant dense<0.000000e+00> : vector<4xf32>
    %37 = vector.multi_reduction <add>, %29, %cst_20 [1] : vector<4x256xf32> to vector<4xf32>
    %38 = vector.shape_cast %37 : vector<4xf32> to vector<4x1xf32>
    %39 = arith.addf %36, %38 : vector<4x1xf32>
    %c0_21 = arith.constant 0 : index
    %c0_22 = arith.constant 0 : index
    %40 = vector.load %arg7[%c0_21, %c0_22] : memref<4x1xf32, #tpu.memory_space<vmem>>, vector<4x1xf32>
    tpu.vector_store %arg7[%c0_21, %c0_22], %39 {strides = array<i32>} : memref<4x1xf32, #tpu.memory_space<vmem>>, vector<4x1xf32>,
    %c0_23 = arith.constant 0 : index
    %c0_24 = arith.constant 0 : index
    %41 = vector.load %arg8[%c0_23, %c0_24] : memref<4x1xf32, #tpu.memory_space<vmem>>, vector<4x1xf32>
    %cst_25 = arith.constant dense<0.000000e+00> : vector<4xf32>
    %42 = vector.multi_reduction <add>, %6, %cst_25 [1] : vector<4x256xf32> to vector<4xf32>
    %43 = vector.shape_cast %42 : vector<4xf32> to vector<4x1xf32>
    %44 = arith.addf %41, %43 : vector<4x1xf32>
    %c0_26 = arith.constant 0 : index
    %c0_27 = arith.constant 0 : index
    %45 = vector.load %arg8[%c0_26, %c0_27] : memref<4x1xf32, #tpu.memory_space<vmem>>, vector<4x1xf32>
    tpu.vector_store %arg8[%c0_26, %c0_27], %44 {strides = array<i32>} : memref<4x1xf32, #tpu.memory_space<vmem>>, vector<4x1xf32>,
    %c0_i32_28 = arith.constant 0 : i32
    %46 = arith.cmpi eq, %arg1, %c0_i32_28 : i32
    %47 = arith.extui %46 : i1 to i32
    %c0_i32_29 = arith.constant 0 : i32
    %48 = arith.cmpi ne, %47, %c0_i32_29 : i32
    scf.if %48 {
      %c0_30 = arith.constant 0 : index
      %c0_31 = arith.constant 0 : index
      %49 = vector.load %arg6[%c0_30, %c0_31] : memref<4x1xf32, #tpu.memory_space<vmem>>, vector<4x1xf32>
      %cst_32 = arith.constant 2.000000e+00 : f32
      %50 = vector.broadcast %cst_32 : f32 to vector<4x1xf32>
      %51 = arith.mulf %50, %49 : vector<4x1xf32>
      %cst_33 = arith.constant 9.99999997E-7 : f32
      %52 = vector.broadcast %cst_33 : f32 to vector<4x1xf32>
      %53 = arith.addf %51, %52 : vector<4x1xf32>
      %c0_34 = arith.constant 0 : index
      %c0_35 = arith.constant 0 : index
      %54 = vector.load %arg7[%c0_34, %c0_35] : memref<4x1xf32, #tpu.memory_space<vmem>>, vector<4x1xf32>
      %c0_36 = arith.constant 0 : index
      %c0_37 = arith.constant 0 : index
      %55 = vector.load %arg8[%c0_36, %c0_37] : memref<4x1xf32, #tpu.memory_space<vmem>>, vector<4x1xf32>
      %56 = arith.addf %54, %55 : vector<4x1xf32>
      %cst_38 = arith.constant 9.99999997E-7 : f32
      %57 = vector.broadcast %cst_38 : f32 to vector<4x1xf32>
      %58 = arith.addf %56, %57 : vector<4x1xf32>
      %59 = arith.divf %53, %58 : vector<4x1xf32>
      %cst_39 = arith.constant 1.000000e+00 : f32
      %60 = vector.broadcast %cst_39 : f32 to vector<4x1xf32>
      %61 = arith.subf %60, %59 : vector<4x1xf32>
      %c0_40 = arith.constant 0 : index
      %c0_41 = arith.constant 0 : index
      %c0_42 = arith.constant 0 : index
      %62 = vector.load %arg4[%c0_40, %c0_41, %c0_42] : memref<1x4x1xf32, #tpu.memory_space<vmem>>, vector<1x4x1xf32>
      %63 = vector.shape_cast %62 : vector<1x4x1xf32> to vector<4x1xf32>
      %64 = vector.shape_cast %61 : vector<4x1xf32> to vector<1x4x1xf32>
      tpu.vector_store %arg4[%c0_40, %c0_41, %c0_42], %64 {strides = array<i32>} : memref<1x4x1xf32, #tpu.memory_space<vmem>>, vector<1x4x1xf32>,
      %c0_43 = arith.constant 0 : index
      %c0_44 = arith.constant 0 : index
      %65 = vector.load %arg9[%c0_43, %c0_44] : memref<1x256xf32, #tpu.memory_space<vmem>>, vector<1x256xf32>
      %cst_45 = arith.constant dense<0.000000e+00> : vector<1xf32>
      %66 = vector.multi_reduction <add>, %65, %cst_45 [1] : vector<1x256xf32> to vector<1xf32>
      %67 = vector.shape_cast %66 : vector<1xf32> to vector<1x1xf32>
      %c0_46 = arith.constant 0 : index
      %c0_47 = arith.constant 0 : index
      %c0_48 = arith.constant 0 : index
      %68 = vector.load %arg5[%c0_46, %c0_47, %c0_48] : memref<1x1x1xf32, #tpu.memory_space<vmem>>, vector<1x1x1xf32>
      %69 = vector.shape_cast %68 : vector<1x1x1xf32> to vector<1x1xf32>
      %70 = vector.shape_cast %67 : vector<1x1xf32> to vector<1x1x1xf32>
      tpu.vector_store %arg5[%c0_46, %c0_47, %c0_48], %70 {strides = array<i32>} : memref<1x1x1xf32, #tpu.memory_space<vmem>>, vector<1x1x1xf32>,
    } else {
    }
    return
  }
  func.func @transform_0(%arg0: i32, %arg1: i32) -> (i32, i32, i32) {
    %c0_i32 = arith.constant 0 : i32
    %c0_i32_0 = arith.constant 0 : i32
    return %arg0, %c0_i32, %arg1 : i32, i32, i32
  }
  func.func @transform_1(%arg0: i32, %arg1: i32) -> (i32, i32, i32) {
    %c0_i32 = arith.constant 0 : i32
    %c0_i32_0 = arith.constant 0 : i32
    return %arg0, %c0_i32, %arg1 : i32, i32, i32
  }
  func.func @transform_2(%arg0: i32, %arg1: i32) -> (i32, i32, i32) {
    %c0_i32 = arith.constant 0 : i32
    %c0_i32_0 = arith.constant 0 : i32
    %c0_i32_1 = arith.constant 0 : i32
    return %arg0, %c0_i32, %c0_i32_0 : i32, i32, i32
  }
  func.func @transform_3(%arg0: i32, %arg1: i32) -> (i32, i32, i32) {
    %c0_i32 = arith.constant 0 : i32
    %c0_i32_0 = arith.constant 0 : i32
    %c0_i32_1 = arith.constant 0 : i32
    return %arg0, %c0_i32, %c0_i32_0 : i32, i32, i32
  }
}

</mosaic_0001>

<bundles_post_ra>
// kernel: tpu_custom_call.1
= control target key start
LH: loop header
LB: loop body
LE: loop exit
PB: predicated region body
PF: predicated region fallthrough
CT: control target
= control target key end

     0   :  { %9 = vsyncpa [#allocation7], 0  ;;  %s982_s0 = inlined_call_operand.hbm [shape: f32[2,4,256], index: 0, kind: input, shape index: {}]   ;;  %s983_s1 = inlined_call_operand.hbm [shape: f32[2,4,256], index: 1, kind: input, shape index: {}]   ;;  %s984_s2 = inlined_call_operand.vmem [shape: f32[2,4,1], index: 2, kind: output, shape index: {0}]   ;;  %s985_s3 = inlined_call_operand.vmem [shape: f32[2,1,1], index: 3, kind: output, shape index: {1}]  }
   0x1   :  { %11 = vsyncpa [#allocation7 + $0x1], 0 }
   0x2   :  { %12 = vsyncpa [#allocation9], 0 }
   0x3   :  { %14 = vsyncpa [#allocation9 + $0x1], 0  ;;  %s844_s12 = smov 0   ;;  %s846_s13 = smov 0  }
   0x4   :  { %s848_s14 = smov 0   ;;  %s850_s15 = smov 0  }
   0x5   :  { %s852_s16 = smov 0   ;;  %s854_s17 = smov 0  }
   0x6 LB: > { %s614_s18 = sadd.s32 4294967295, %s821_s17   ;;  %s32_s19 = sadd.s32 1, %s817_s16  ;;  %s821_s17 = sphi %s854_s17, %s20_s17   ;;  %s817_s16 = sphi %s852_s16, %s994_s16   ;;  %s813_s15 = sphi %s850_s15, %s993_s15   ;;  %s809_s14 = sphi %s848_s14, %s992_s14   ;;  %s805_s13 = sphi %s846_s13, %s991_s13   ;;  %s801_s12 = sphi %s844_s12, %s990_s12  }
   0x7   : > { %p34_p0 = scmp.ge.s32.totalorder %s32_s19, 2  ;;  %s41_s20 = sadd.s32 1, %s809_s14 }
   0x8   : > { %p48_p1 = scmp.ne.s32.totalorder %s809_s14, %s805_s13  ;;  %p49_p2 = scmp.eq.s32.totalorder %s821_s17, 0 }
   0x9   : > { %s996_s19 = smov (%p34_p0, %s32_s19), 0  ;;  %p54_p4 = scmp.ne.s32.totalorder %s805_s13, %s801_s12 }
   0xa   : > { %p880_p3 = por %p49_p2, %p48_p1  ;;  %s36_s22 = ssub.s32 %s817_s16, %s996_s19 }
   0xb   : > { %p55_p5 = scmp.eq.s32.totalorder %s614_s18, 0  ;;  %p39_p6 = scmp.eq.s32.totalorder %s36_s22, 0 }
   0xc   : > { %p643_p8 = scmp.lt.s32.totalorder %s821_s17, 2  ;;  %s158_s25 = sand.u32 1, %s809_s14  }
   0xd   : > { %p887_p7 = por %p55_p5, %p54_p4  ;;  %s630_s26 = sshll.u32 %s817_s16, 3 }
   0xe   : > { %s893_s24 = scalar_select %p39_p6, %s809_s14, %s41_s20  }
   0xf   : > { %s618_s27 = sshll.u32 %s158_s25, 3  ;;  %s169_s30 = scalar_lea.hbm %s982_s0, %s630_s26 }
  0x10   : > { %s171_s4 = sshll.u32 %s169_s30, 4  ;;  %s162_s5 = scalar_lea.vmem [#allocation6], %s618_s27  ;;  %s172_s4 = int_to_ptr.hbm [resolvable:$true] %s171_s4 }
  0x11   : > { %s173_s6 = sshll.u32 %s162_s5, 4  ;;  %p637_p9 = pnand %p643_p8, %p880_p3  ;;  %s174_s6 = int_to_ptr.vmem [resolvable:$true] %s173_s6 }
  0x12   : > { %p624_p10 = scmp.ge.s32.totalorder %s821_s17, 1  ;;  %p200_p11 = scmp.lt.s32.totalorder %s821_s17, 3 }
  0x13   : > { %s159_s7 = scalar_lea.sflag [#allocation7], %s158_s25  ;;  %s191_s10 = scalar_lea.hbm %s983_s1, %s630_s26 }
  0x14   : > { %639 = dma.hbm_to_vmem [thread:$0]  (!%p637_p9), %s172_s4, 128, %s174_s6, %s159_s7  }
  0x15   : > { %p201_p12 = pnand %p624_p10, %p200_p11  ;;  %s193_s11 = sshll.u32 %s191_s10, 4  ;;  %s194_s11 = int_to_ptr.hbm [resolvable:$true] %s193_s11 }
  0x16   : > { %s184_s12 = scalar_lea.vmem [#allocation8], %s618_s27  ;;  %s181_s20 = scalar_lea.sflag [#allocation9], %s158_s25 }
  0x17   : > { %s195_s18 = sshll.u32 %s184_s12, 4  ;;  %204 = sbr.rel (%p201_p12) target bundleno = 294 (0x126), region = 28  ;;  %s196_s18 = int_to_ptr.vmem [resolvable:$true] %s195_s18 }
  0x18   : > { %642 = dma.hbm_to_vmem [thread:$0]  (!%p637_p9), %s194_s11, 128, %s196_s18, %s181_s20  }
  0x19   : > { %s206_s21 = sand.u32 (!%p201_p12), 1, %s805_s13  }
  0x1a   : > { %s625_s22 = sshll.u32 (!%p201_p12), %s206_s21, 3  ;;  %s207_s28 = scalar_lea.sflag (!%p201_p12), [#allocation7], %s206_s21 }
  0x1b   : > { %s210_s29 = scalar_lea.vmem (!%p201_p12), [#allocation6], %s625_s22 }
  0x1c   : > { %792 = dma.done.wait (%p887_p7), %s207_s28, 128  }
  0x1d   : > { %794 = vsyncadd (%p887_p7), %s207_s28, 4294967168  ;;  %s217_s26 = scalar_lea.sflag [#allocation9], %s206_s21  ;;  %s912_s27 = scalar_lea.vmem [#allocation8], %s625_s22 }
  0x1e   : > { %796 = dma.done.wait (%p887_p7), %s217_s26, 128  }
  0x1f   : > { %798 = vsyncadd (%p887_p7), %s217_s26, 4294967168  ;;  %v273_v0 = vld [vmem:[%s210_s29] sm:$0xff]  ;;  %vm281_vm0 = vcmask 1043456   ;;  %vm264_vm6 = vcmask 3072   ;;  %vm367_vm7 = vcmask 1040384   ;;  %p253_p13 = scmp.lt.s32.totalorder %s813_s15, 1 }
  0x20   : > { %276 = vst [vmem:[#allocation1] ss:$2 sm:$0xff] %v273_v0  ;;  %vm485_vm8 = vcmask 0  }
  0x21   : > { %s998_s15 = smov (!%p253_p13, %s813_s15), 1 }
  0x22   : > { %s259_s30 = scalar_lea.vmem %s985_s3, %s998_s15  ;;  %s627_s4 = sshll.u32 %s998_s15, 2 }
  0x23   : > { %s256_s7 = scalar_lea.vmem %s984_s2, %s627_s4 }
  0x27   : > { %v277_v1 = vld.sshfl [vmem:[#allocation1] sm:$0xff pattern:$0x75316420]  ;;  %v278_v2 = vld.sshfl [vmem:[#allocation1 + $0x8] sm:$0xff pattern:$0x75316420] }
  0x28   : > { %v282_v3 = vsel %vm281_vm0, %v277_v1, -inf  ;;  %v289_v4 = vsel %vm281_vm0, %v278_v2, -inf  ;;  %v274_v2 = vld [vmem:[%s912_s27] sm:$0xff] }
  0x29   : > { %v283_v5 = vrot.slane %v282_v3, 4  ;;  %v290_v6 = vrot.slane %v289_v4, 4 }
  0x2b   : > { %v284_v7 = vmax.f32 %v282_v3, %v283_v5  ;;  %v291_v8 = vmax.f32 %v289_v4, %v290_v6 }
  0x2d   : > { %v285_v9 = vrot.slane %v284_v7, 2  ;;  %v292_v10 = vrot.slane %v291_v8, 2 }
  0x2f   : > { %v286_v11 = vmax.f32 %v284_v7, %v285_v9  ;;  %v293_v12 = vmax.f32 %v291_v8, %v292_v10  ;;  %v268_v8 = vlaneseq }
  0x31   : > { %v287_v13 = vrot.slane %v286_v11, 1  ;;  %v294_v14 = vrot.slane %v293_v12, 1  ;;  %vm926_vm5 = vcmp.lt.s32.totalorder %v268_v8, 256 }
  0x33   : > { %v288_v15 = vmax.f32 %v286_v11, %v287_v13  ;;  %v295_v16 = vmax.f32 %v293_v12, %v294_v14  ;;  %v823_v11 = vmov 0.0  }
  0x34   : > { %272 = vst.msk [vmem:[#allocation5] sm:$0x3] %vm926_vm5, %v823_v11 }
  0x35   : > { %v298_v17 = vrot.slane %v295_v16, 4  ;;  %v376_v18 = vsub.f32 0.0, %v288_v15  ;;  %v377_v19 = vsub.f32 0.0, %v295_v16  ;;  %266 = vst.msk [vmem:[#allocation3] sm:$0xf] %vm264_vm6, %v823_v11 }
  0x36   : > { %265 = vst.msk [vmem:[#allocation2] sm:$0xf] %vm264_vm6, %v823_v11 }
  0x37   : > { %v299_v20 = vsel %vm281_vm0, %v288_v15, %v298_v17  ;;  %v378_v21 = vmul.f32 1.442695, %v376_v18  ;;  %v380_v22 = vmul.f32 1.442695, %v377_v19  ;;  %267 = vst.msk [vmem:[#allocation4] sm:$0xf] %vm264_vm6, %v823_v11 }
  0x38   : > { %v301_v23 = vsub.f32 %v273_v0, %v299_v20 }
  0x39   : > { %693 = vpow2.f32 %v380_v22 }
  0x3a   : > { %v302_v24 = vmul.f32 1.442695, %v301_v23  ;;  %695 = vpow2.f32 %v378_v21 }
  0x3c   : > { %697 = vpow2.f32 %v302_v24 }
  0x3f   : > { %v694_v25 = vpop.eup %693 }
  0x40   : > { %v696_v26 = vpop.eup %695  ;;  %v384_v27 = vrot.slane %v694_v25, 4 }
  0x42   : > { %v698_v28 = vpop.eup %697  ;;  %v385_v29 = vsel %vm281_vm0, %v696_v26, %v384_v27 }
  0x43   : > { %305 = vst [vmem:[#allocation1] ss:$2 sm:$0xff] %v698_v28  ;;  %v387_v30 = vadd.f32 %v698_v28, %v385_v29 }
  0x45   : > { %699 = vrcp.f32 %v387_v30  ;;  %vm393_vm1 = vweird.f32 %v387_v30  ;;  %v397_v55 = vand.u32 2147483647, %v387_v30  ;;  %v399_v56 = vand.u32 2147483648, %v387_v30 }
  0x47   : > { %vm398_vm4 = vcmp.eq.f32.partialorder %v397_v55, 8.507059e+37 }
  0x4a   : > { %v306_v31 = vld.sshfl [vmem:[#allocation1] sm:$0xff pattern:$0x75316420]  ;;  %v307_v32 = vld.sshfl [vmem:[#allocation1 + $0x8] sm:$0xff pattern:$0x75316420] }
  0x4b   : > { %v310_v33 = vsel %vm281_vm0, %v306_v31, 0.0  ;;  %v317_v34 = vsel %vm281_vm0, %v307_v32, 0.0  ;;  %331 = vst [vmem:[#allocation1] ss:$2 sm:$0xff] %v273_v0  ;;  %v700_v41 = vpop.eup %699  ;;  %v400_v0 = vor.u32 1.1754944e-38, %v399_v56 }
  0x4c   : > { %v311_v35 = vrot.slane %v310_v33, 4  ;;  %v318_v36 = vrot.slane %v317_v34, 4  ;;  %v389_v46 = vmul.f32 %v700_v41, %v387_v30  ;;  %vm394_vm2 = vweird.f32 %v700_v41  ;;  %v419_v56 = vld [vmem:[#allocation3] sm:$0xf] }
  0x4d   : > { %vm395_vm3 = vmor %vm393_vm1, %vm394_vm2 }
  0x4e   : > { %v312_v37 = vadd.f32 %v311_v35, %v310_v33  ;;  %v319_v38 = vadd.f32 %v318_v36, %v317_v34  ;;  %v390_v49 = vsub.f32 1.0, %v389_v46  ;;  %v330_v33 = vld [vmem:[#allocation5] sm:$0x3] }
  0x50   : > { %v313_v39 = vrot.slane %v312_v37, 2  ;;  %v320_v40 = vrot.slane %v319_v38, 2  ;;  %v391_v50 = vmul.f32 %v700_v41, %v390_v49 }
  0x52   : > { %v314_v42 = vadd.f32 %v313_v39, %v312_v37  ;;  %v321_v43 = vadd.f32 %v320_v40, %v319_v38  ;;  %v332_v58 = vld.sshfl [vmem:[#allocation1] sm:$0xff pattern:$0x75316420]  ;;  %v333_v59 = vld.sshfl [vmem:[#allocation1 + $0x8] sm:$0xff pattern:$0x75316420]  ;;  %v392_v60 = vadd.f32 %v700_v41, %v391_v50 }
  0x54   : > { %v315_v44 = vrot.slane %v314_v42, 1  ;;  %v322_v45 = vrot.slane %v321_v43, 1  ;;  %v396_v1 = vsel %vm395_vm3, %v700_v41, %v392_v60 }
  0x55   : > { %v401_v5 = vsel %vm398_vm4, %v400_v0, %v396_v1 }
  0x56   : > { %v316_v47 = vadd.f32 %v315_v44, %v314_v42  ;;  %v323_v48 = vadd.f32 %v322_v45, %v321_v43  ;;  %v402_v7 = vmul.f32 %v698_v28, %v401_v5 }
  0x58   : > { %701 = vlog2.f32 %v316_v47  ;;  %v404_v9 = vmul.f32 %v402_v7, %v274_v2 }
  0x59   : > { %703 = vlog2.f32 %v323_v48 }
  0x5e   : > { %v702_v51 = vpop.eup %701 }
  0x5f   : > { %v704_v52 = vpop.eup %703  ;;  %v325_v53 = vmul.f32 0.6931472, %v702_v51 }
  0x60   : > { %v327_v54 = vmul.f32 0.6931472, %v704_v52 }
  0x61   : > { %v328_v57 = vadd.f32 %v325_v53, %v288_v15  ;;  %v403_v53 = vld [vmem:[#allocation2] sm:$0xf] }
  0x62   : > { %v329_v61 = vadd.f32 %v327_v54, %v295_v16 }
  0x63   : > { %v336_v62 = vsub.f32 %v328_v57, %v332_v58 }
  0x64   : > { %v337_v63 = vsub.f32 %v329_v61, %v333_v59  ;;  %v433_v59 = vld [vmem:[#allocation4] sm:$0xf] }
  0x66   : > { %v340_v3 = vrot.slane %v337_v63, 4 }
  0x68   : > { %v341_v4 = vsel %vm281_vm0, %v336_v62, %v340_v3 }
  0x69   : > { %v343_v6 = vmul.f32 %v341_v4, %v274_v2 }
  0x6b   : > { %345 = vst [vmem:[#allocation1] ss:$2 sm:$0xff] %v343_v6 }
  0x72   : > { %v346_v12 = vld.sshfl [vmem:[#allocation1] sm:$0xff pattern:$0x75316420]  ;;  %v347_v13 = vld.sshfl [vmem:[#allocation1 + $0x8] sm:$0xff pattern:$0x75316420] }
  0x73   : > { %406 = vst [vmem:[#allocation1] ss:$2 sm:$0xff] %v404_v9  ;;  %v350_v14 = vsel %vm281_vm0, %v346_v12, 0.0  ;;  %v357_v15 = vsel %vm281_vm0, %v347_v13, 0.0 }
  0x74   : > { %v351_v16 = vrot.slane %v350_v14, 4  ;;  %v358_v17 = vrot.slane %v357_v15, 4 }
  0x76   : > { %v352_v18 = vadd.f32 %v351_v16, %v350_v14  ;;  %v359_v19 = vadd.f32 %v358_v17, %v357_v15 }
  0x78   : > { %v353_v20 = vrot.slane %v352_v18, 2  ;;  %v360_v21 = vrot.slane %v359_v19, 2 }
  0x7a   : > { %v407_v22 = vld.sshfl [vmem:[#allocation1] sm:$0xff pattern:$0x75316420]  ;;  %v408_v23 = vld.sshfl [vmem:[#allocation1 + $0x8] sm:$0xff pattern:$0x75316420]  ;;  %v354_v24 = vadd.f32 %v353_v20, %v352_v18  ;;  %v361_v25 = vadd.f32 %v360_v21, %v359_v19 }
  0x7b   : > { %421 = vst [vmem:[#allocation1] ss:$2 sm:$0xff] %v402_v7  ;;  %v411_v26 = vsel %vm281_vm0, %v407_v22, 0.0  ;;  %v412_v27 = vsel %vm281_vm0, %v408_v23, 0.0 }
  0x7c   : > { %v413_v28 = vadd.f32 %v412_v27, %v411_v26  ;;  %v355_v29 = vrot.slane %v354_v24, 1  ;;  %v362_v30 = vrot.slane %v361_v25, 1 }
  0x7e   : > { %414 = vadd.xlane.f32.xlu1 %v413_v28  ;;  %v356_v31 = vadd.f32 %v355_v29, %v354_v24  ;;  %v363_v32 = vadd.f32 %v362_v30, %v361_v25 }
  0x80   : > { %v366_v34 = vrot.slane %v363_v32, 7 }
  0x82   : > { %v422_v35 = vld.sshfl [vmem:[#allocation1] sm:$0xff pattern:$0x75316420]  ;;  %v423_v36 = vld.sshfl [vmem:[#allocation1 + $0x8] sm:$0xff pattern:$0x75316420]  ;;  %v368_v37 = vsel %vm367_vm7, %v356_v31, %v366_v34 }
  0x83   : > { %v426_v38 = vsel %vm281_vm0, %v422_v35, 0.0  ;;  %v427_v39 = vsel %vm281_vm0, %v423_v36, 0.0  ;;  %435 = vst [vmem:[#allocation1] ss:$2 sm:$0xff] %v274_v2  ;;  %v370_v40 = vadd.f32 %v368_v37, %v330_v33 }
  0x84   : > { %v428_v41 = vadd.f32 %v427_v39, %v426_v38 }
  0x85   : > { %375 = vst.msk [vmem:[#allocation5] sm:$0x3] %vm926_vm5, %v370_v40 }
  0x86   : > { %429 = vadd.xlane.f32.xlu0 %v428_v41 }
  0x8a   : > { %v436_v42 = vld.sshfl [vmem:[#allocation1] sm:$0xff pattern:$0x75316420]  ;;  %v437_v43 = vld.sshfl [vmem:[#allocation1 + $0x8] sm:$0xff pattern:$0x75316420] }
  0x8b   : > { %v440_v44 = vsel %vm281_vm0, %v436_v42, 0.0  ;;  %v441_v45 = vsel %vm281_vm0, %v437_v43, 0.0 }
  0x8c   : > { %v442_v46 = vadd.f32 %v441_v45, %v440_v44  ;;  %v474_v47 = vld [vmem:[#allocation5] sm:$0x3] }
  0x8d   : > { %v476_v48 = vperm.slane %v474_v47, 0  ;;  %v477_v49 = vperm.slane %v474_v47, 1 }
  0x8e   : > { %443 = vadd.xlane.f32.xlu0 %v442_v46 }
  0x8f   : > { %v480_v50 = vsel %vm367_vm7, %v476_v48, 0.0  ;;  %v481_v51 = vsel %vm367_vm7, %v477_v49, 0.0 }
  0x90   : > { %v482_v52 = vadd.f32 %v481_v51, %v480_v50 }
  0x92   : > { %483 = vadd.xlane.f32.xlu1 %v482_v52 }
  0xf1   : > { %v415_v54 = vpop.xlane.xlu1 %414 }
  0xf2   : > { %v416_v55 = vadd.f32 %v415_v54, %v403_v53 }
  0xf4   : > { %418 = vst.msk [vmem:[#allocation2] sm:$0xf] %vm264_vm6, %v416_v55 }
  0xf9   : > { %v430_v57 = vpop.xlane.xlu0 %429 }
  0xfa   : > { %v431_v58 = vadd.f32 %v430_v57, %v419_v56 }
  0xfb   : > { %v450_v4 = vld [vmem:[#allocation2] sm:$0xf] }
  0xfc   : > { %432 = vst.msk [vmem:[#allocation3] sm:$0xf] %vm264_vm6, %v431_v58  ;;  %v451_v6 = vmul.f32 2.0, %v450_v4 }
  0xfe   : > { %v452_v11 = vadd.f32 1e-06, %v451_v6 }
 0x101   : > { %v444_v60 = vpop.xlane.xlu0 %443 }
 0x102   : > { %v445_v61 = vadd.f32 %v444_v60, %v433_v59 }
 0x103   : > { %v453_v63 = vld [vmem:[#allocation3] sm:$0xf] }
 0x104   : > { %446 = vst.msk [vmem:[#allocation4] sm:$0xf] %vm264_vm6, %v445_v61 }
 0x105   : > { %v484_v62 = vpop.xlane.xlu1 %483 }
 0x106   : > { %486 = vst.msk [vmem:[%s259_s30] sm:$0x1] %vm485_vm8, %v484_v62 }
 0x10b   : > { %v454_v0 = vld [vmem:[#allocation4] sm:$0xf] }
 0x10c   : > { %v455_v1 = vadd.f32 %v454_v0, %v453_v63 }
 0x10e   : > { %v456_v2 = vadd.f32 1e-06, %v455_v1 }
 0x110   : > { %705 = vrcp.f32 %v456_v2  ;;  %v468_v8 = vand.u32 2147483648, %v456_v2  ;;  %v466_v10 = vand.u32 2147483647, %v456_v2  ;;  %vm462_vm10 = vweird.f32 %v456_v2 }
 0x112   : > { %v469_v13 = vor.u32 1.1754944e-38, %v468_v8  ;;  %vm467_vm12 = vcmp.eq.f32.partialorder %v466_v10, 8.507059e+37 }
 0x116   : > { %v706_v3 = vpop.eup %705 }
 0x117   : > { %v458_v5 = vmul.f32 %v706_v3, %v456_v2  ;;  %vm463_vm9 = vweird.f32 %v706_v3 }
 0x118   : > { %vm464_vm11 = vmor %vm462_vm10, %vm463_vm9 }
 0x119   : > { %v459_v7 = vsub.f32 1.0, %v458_v5 }
 0x11b   : > { %v460_v9 = vmul.f32 %v706_v3, %v459_v7 }
 0x11d   : > { %v461_v12 = vadd.f32 %v706_v3, %v460_v9 }
 0x11f   : > { %v465_v14 = vsel %vm464_vm11, %v706_v3, %v461_v12 }
 0x120   : > { %v470_v15 = vsel %vm467_vm12, %v469_v13, %v465_v14 }
 0x121   : > { %v471_v16 = vmul.f32 %v470_v15, %v452_v11 }
 0x123   : > { %v472_v17 = vsub.f32 1.0, %v471_v16 }
 0x125   : > { %473 = vst.msk [vmem:[%s256_s7] sm:$0xf] %vm264_vm6, %v472_v17 }
 0x126 PF: > { %s20_s17 = sadd.s32 1, %s821_s17   ;;  %s990_s12 = smov %s805_s13 }
 0x127   : > { %p17_p0 = scmp.ge.s32.totalorder %s20_s17, 4   ;;  %s991_s13 = smov %s809_s14 }
 0x128   : > { %s992_s14 = smov %s893_s24  ;;  %s993_s15 = smov %s817_s16 }
 0x129   : > { %s994_s16 = smov %s996_s19  ;;  %19 = sbr.rel (!%p17_p0) target bundleno = 6 (0x6), region = 101 }
 0x12e   :  { %518 = vsyncpa [#allocation7], 1 }
 0x12f   :  { %520 = vsyncpa [#allocation7 + $0x1], 1 }
 0x130   :  { %521 = vsyncpa [#allocation9], 1 }
 0x131   :  { %523 = vsyncpa [#allocation9 + $0x1], 1 }

</bundles_post_ra>
